<compile_context>
chip_gen: v7x
topology: tpu7x:2x2x1
jax: 0.10.0
libtpu: 0.0.40
codegen_flags: <defaults>
</compile_context>

<pallas_src>
import math
import jax
import jax.numpy as jnp
from jax import lax
from jax.experimental import pallas as pl
from jax.experimental.pallas import tpu as pltpu


def cq_attn_kernel(c_len_ref, q_len_ref,            # scalar prefetch (SMEM)
                   c_ref, q_ref, wc_ref, wq_ref, wcq_ref, b_ref,
                   out_ref):
    f32, bf16 = jnp.float32, jnp.bfloat16
    blk = pl.program_id(0)
    Bblk, Lc, D = c_ref.shape
    Lq = q_ref.shape[1]

    wc_col = wc_ref[...]         # [D, 1]
    wq_row = wq_ref[...]         # [1, D]
    w_cq = wcq_ref[...]          # [1, D]
    bias = b_ref[0]              # scalar (SMEM)

    q_ids = lax.broadcasted_iota(jnp.int32, (Lc, Lq), 1)
    c_ids = lax.broadcasted_iota(jnp.int32, (Lc, Lq), 0)
    ones_lc = jnp.ones((Lc, 1), dtype=bf16)
    neg = f32(-1e30)

    # dot_general dimension_numbers
    nt = (((1,), (1,)), ((), ()))    # contract last dims:  A @ B^T (no transpose op)
    tn = (((0,), (0,)), ((), ()))    # contract dim 0:      A^T @ B (no transpose op)
    nn = (((1,), (0,)), ((), ()))    # canonical matmul

    for bb in range(Bblk):           # static unroll over the batch block
        clen = c_len_ref[blk * Bblk + bb]   # valid context length
        qlen = q_len_ref[blk * Bblk + bb]   # valid question length

        c = c_ref[bb]                # [Lc, D] f32
        q = q_ref[bb]                # [Lq, D] f32
        c_b = c.astype(bf16)
        q_b = q.astype(bf16)

        # ---- similarity S = c@W_c + (q@W_q)^T + c @ (q*W_cq)^T + b  (f32) ---
        s_c = lax.dot_general(c, wc_col, nn, preferred_element_type=f32)     # [Lc,1] MXU
        s_q = lax.dot_general(wq_row, q, nt, preferred_element_type=f32)     # [1,Lq] MXU
        s_cq = lax.dot_general(c, q * w_cq, nt, preferred_element_type=f32)  # [Lc,Lq]
        S = s_cq + s_c + s_q + bias

        # ---- q-axis masked softmax numerators (normalization deferred) ------
        l1 = jnp.where(q_ids < qlen, S, neg)
        m1 = jnp.max(l1, axis=1, keepdims=True)
        e1 = jnp.exp(l1 - m1)
        row_sum = jnp.sum(e1, axis=1, keepdims=True)                         # [Lc,1]
        e1_b = e1.astype(bf16)

        # ---- c-axis masked softmax folded into the matmul (S2 never built) --
        l2 = jnp.where(c_ids < clen, S, neg)
        m2 = jnp.max(l2, axis=0, keepdims=True)
        e2_b = jnp.exp(l2 - m2).astype(bf16)                                 # [Lc,Lq]
        # tmp = S2^T @ c via contracted-dim-0 dots (no explicit transpose):
        tmp_raw = lax.dot_general(e2_b, c_b, tn, preferred_element_type=f32)      # [Lq,D]
        col_sum = lax.dot_general(e2_b, ones_lc, tn, preferred_element_type=f32)  # [Lq,1]
        tmp_b = (tmp_raw * pl.reciprocal(col_sum, approx=True)).astype(bf16)

        # ---- fused A / Bm dot ([Lq, 2D] RHS fills the 256-wide MXU) ---------
        rhs = jnp.concatenate([q_b, tmp_b], axis=-1)                         # [Lq,2D]
        ab = lax.dot_general(e1_b, rhs, nn, preferred_element_type=f32)      # [Lc,2D]
        ab = ab * pl.reciprocal(row_sum, approx=True)                        # S1-normalize
        A = ab[:, :D]
        Bm = ab[:, D:]

        # ---- G = [c, A, c*A, c*B]: four direct D-wide slice stores ----------
        od = out_ref.dtype
        out_ref[bb, :, 0:D] = c.astype(od)
        out_ref[bb, :, D:2 * D] = A.astype(od)
        out_ref[bb, :, 2 * D:3 * D] = (c * A).astype(od)
        out_ref[bb, :, 3 * D:4 * D] = (c * Bm).astype(od)


def cq_attn(c, q, mask_c, mask_q, W_c, W_q, W_cq, b, *,
            out_dtype=None, batch_block=None):
    B, Lc, D = c.shape
    Lq = q.shape[1]
    if out_dtype is None:
        out_dtype = c.dtype        # pass jnp.bfloat16 to halve HBM writeback

    # Prefix (padding) masks -> per-example valid lengths (scalar prefetch).
    c_len = jnp.sum(mask_c.astype(jnp.int32), axis=1).astype(jnp.int32)   # [B]
    q_len = jnp.sum(mask_q.astype(jnp.int32), axis=1).astype(jnp.int32)   # [B]

    # Pad seq dims to TPU-friendly sizes; padding is masked out in-kernel via
    # the length scalars and sliced off below.  SUB=16: full bf16 sublane
    # packing for the c / e1 rows feeding the MXU.
    LANE, SUB = 128, 16
    Lq_p = max(LANE, pl.cdiv(Lq, LANE) * LANE)
    Lc_p = pl.cdiv(Lc, SUB) * SUB

    out_itemsize = jnp.dtype(out_dtype).itemsize
    in_itemsize = jnp.dtype(c.dtype).itemsize

    # Per-element VMEM footprint: double-buffered c/q/out blocks plus ~8
    # [Lc,Lq] f32 in-body temporaries.  Pick the batch block from a ~20 MiB
    # budget (fits the 32 MiB scoped limit on all chips, incl. v5e override),
    # but keep >= 2 grid steps when B >= 2 so both v7x TensorCores get work.
    per_elem = (2 * (Lc_p * D * in_itemsize + Lq_p * D * in_itemsize
                     + Lc_p * 4 * D * out_itemsize)
                + 8 * Lc_p * Lq_p * 4)
    if batch_block is None:
        budget = 20 * 2 ** 20
        batch_block = int(max(1, min(8, budget // max(per_elem, 1))))
        while batch_block > 1 and -(-B // batch_block) < 2:
            batch_block -= 1
    Bblk = int(batch_block)
    B_p = -(-B // Bblk) * Bblk

    if Lq_p != Lq:
        q = jnp.pad(q, ((0, 0), (0, Lq_p - Lq), (0, 0)))
    if Lc_p != Lc:
        c = jnp.pad(c, ((0, 0), (0, Lc_p - Lc), (0, 0)))
    if B_p != B:
        c = jnp.pad(c, ((0, B_p - B), (0, 0), (0, 0)))
        q = jnp.pad(q, ((0, B_p - B), (0, 0), (0, 0)))
        c_len = jnp.pad(c_len, ((0, B_p - B),))
        q_len = jnp.pad(q_len, ((0, B_p - B),))

    wc_col = W_c.reshape(D, 1).astype(jnp.float32)     # [D, 1] (MXU matvec)
    wq_row = W_q.reshape(1, D).astype(jnp.float32)     # [1, D]
    wcq_row = W_cq.reshape(1, D).astype(jnp.float32)   # [1, D]
    b1 = b.reshape(1).astype(jnp.float32)              # scalar bias -> SMEM

    nsteps = B_p // Bblk
    flops = int(B_p * (8 * Lc_p * Lq_p * D + 6 * Lc_p * D + 2 * Lq_p * D))
    transcendentals = int(B_p * 2 * Lc_p * Lq_p)
    bytes_accessed = int(B_p * ((Lc_p + Lq_p) * D * in_itemsize
                                + Lc_p * 4 * D * out_itemsize))

    out = pl.pallas_call(
        cq_attn_kernel,
        out_shape=jax.ShapeDtypeStruct((B_p, Lc_p, 4 * D), out_dtype),
        grid_spec=pltpu.PrefetchScalarGridSpec(
            num_scalar_prefetch=2,
            grid=(nsteps,),
            in_specs=[
                pl.BlockSpec((Bblk, Lc_p, D), lambda i, cl, ql: (i, 0, 0)),   # c
                pl.BlockSpec((Bblk, Lq_p, D), lambda i, cl, ql: (i, 0, 0)),   # q
                pl.BlockSpec((D, 1), lambda i, cl, ql: (0, 0)),               # W_c
                pl.BlockSpec((1, D), lambda i, cl, ql: (0, 0)),               # W_q
                pl.BlockSpec((1, D), lambda i, cl, ql: (0, 0)),               # W_cq
                pl.BlockSpec(memory_space=pltpu.MemorySpace.SMEM),            # b
            ],
            out_specs=pl.BlockSpec((Bblk, Lc_p, 4 * D),
                                   lambda i, cl, ql: (i, 0, 0)),
        ),
        compiler_params=pltpu.CompilerParams(
            dimension_semantics=("parallel",),
            vmem_limit_bytes=32 * 2 ** 20),
        cost_estimate=pl.CostEstimate(flops=flops,
                                      transcendentals=transcendentals,
                                      bytes_accessed=bytes_accessed),
    )(c_len, q_len, c, q, wc_col, wq_row, wcq_row, b1)

    return out[:B, :Lc, :]


def cq_attn_reference(c, q, mask_c, mask_q, W_c, W_q, W_cq, b):
    """Pure-JAX f32 reference mirroring the PyTorch forward (eval mode)."""
    mask_c = mask_c.astype(jnp.float32)[:, :, None]    # [B, Lc, 1]
    mask_q = mask_q.astype(jnp.float32)[:, None, :]    # [B, 1, Lq]
    S_c = jnp.matmul(c, W_c)                            # [B, Lc, 1]
    S_q = jnp.swapaxes(jnp.matmul(q, W_q), 1, 2)        # [B, 1, Lq]
    S_cq = jnp.matmul(c * W_cq, jnp.swapaxes(q, 1, 2))  # [B, Lc, Lq]
    S = S_c + S_q + S_cq + b

    def msoftmax(logits, mask, axis):
        masked = mask * logits + (1.0 - mask) * (-1e30)
        return jax.nn.softmax(masked, axis=axis)

    S1 = msoftmax(S, mask_q, axis=2)
    S2 = msoftmax(S, mask_c, axis=1)
    A = jnp.matmul(S1, q)
    S_temp = jnp.matmul(S1, jnp.swapaxes(S2, 1, 2))
    Bm = jnp.matmul(S_temp, c)
    return jnp.concatenate([c, A, c * A, c * Bm], axis=2)


if __name__ == "__main__":
    key = jax.random.PRNGKey(0)
    k_c, k_q, k_wc, k_wq, k_wcq = jax.random.split(key, 5)

    B, Lc, Lq, D = 2, 16, 8, 32

    c = jax.random.normal(k_c, (B, Lc, D), dtype=jnp.float32)
    q = jax.random.normal(k_q, (B, Lq, D), dtype=jnp.float32)

    # Masks: valid prefix lengths (padding at the tail), as in QANet.
    c_lens = jnp.array([12, 16])
    q_lens = jnp.array([8, 5])
    mask_c = (jnp.arange(Lc)[None, :] < c_lens[:, None]).astype(jnp.float32)
    mask_q = (jnp.arange(Lq)[None, :] < q_lens[:, None]).astype(jnp.float32)

    # Deterministic kaiming_uniform-style init (fan_in, relu gain = sqrt(2)).
    bound_vec = math.sqrt(6.0 / 1.0)      # W_c / W_q: fan_in = 1
    bound_cq = math.sqrt(6.0 / D)         # W_cq: fan_in = D
    W_c = jax.random.uniform(k_wc, (D, 1), minval=-bound_vec, maxval=bound_vec,
                             dtype=jnp.float32)
    W_q = jax.random.uniform(k_wq, (D, 1), minval=-bound_vec, maxval=bound_vec,
                             dtype=jnp.float32)
    W_cq = jax.random.uniform(k_wcq, (1, 1, D), minval=-bound_cq,
                              maxval=bound_cq, dtype=jnp.float32)
    b = jnp.zeros((1,), dtype=jnp.float32)

    ref = cq_attn_reference(c, q, mask_c, mask_q, W_c, W_q, W_cq, b)

    # Default heuristic (Bblk=1 here -> 2 grid steps, one per batch element).
    out = jax.block_until_ready(cq_attn(c, q, mask_c, mask_q, W_c, W_q, W_cq, b))
    assert out.shape == (B, Lc, 4 * D), out.shape
    # bf16 MXU operands + approx softmax reciprocal vs. an all-f32 reference.
    assert jnp.allclose(out, ref, atol=1e-1, rtol=1e-2), \
        float(jnp.max(jnp.abs(out - ref)))

    # Explicit batch blocking (Bblk=2 -> single grid step, unrolled in-kernel).
    out2 = jax.block_until_ready(
        cq_attn(c, q, mask_c, mask_q, W_c, W_q, W_cq, b, batch_block=2))
    assert out2.shape == (B, Lc, 4 * D), out2.shape
    assert jnp.allclose(out2, ref, atol=1e-1, rtol=1e-2), \
        float(jnp.max(jnp.abs(out2 - ref)))

    print("KERNEL_OK")
</pallas_src>

<mosaic_0001>
module attributes {stable_mosaic.version = 11 : i64} {
  func.func @cq_attn_kernel(%arg0: i32, %arg1: memref<2xi32, #tpu.memory_space<smem>>, %arg2: memref<2xi32, #tpu.memory_space<smem>>, %arg3: memref<1x16x32xf32, #tpu.memory_space<vmem>>, %arg4: memref<1x128x32xf32, #tpu.memory_space<vmem>>, %arg5: memref<32x1xf32, #tpu.memory_space<vmem>>, %arg6: memref<1x32xf32, #tpu.memory_space<vmem>>, %arg7: memref<1x32xf32, #tpu.memory_space<vmem>>, %arg8: memref<1xf32, #tpu.memory_space<smem>>, %arg9: memref<1x16x128xf32, #tpu.memory_space<vmem>>) attributes {dimension_semantics = [#tpu.dimension_semantics<parallel>], iteration_bounds = array<i64: 2>, scalar_prefetch = 2 : i64, scratch_operands = 0 : i64, tpu.core_type = #tpu.core_type<tc>, window_params = [{transform_indices = @transform_0, window_bounds = array<i64: 1, 16, 32>}, {transform_indices = @transform_1, window_bounds = array<i64: 1, 128, 32>}, {pipeline_mode = #tpu.pipeline_mode<synchronous>, transform_indices = @transform_2, window_bounds = array<i64: 32, 1>}, {pipeline_mode = #tpu.pipeline_mode<synchronous>, transform_indices = @transform_3, window_bounds = array<i64: 1, 32>}, {pipeline_mode = #tpu.pipeline_mode<synchronous>, transform_indices = @transform_4, window_bounds = array<i64: 1, 32>}, {transform_indices = @transform_5, window_bounds = array<i64: 1>}, {transform_indices = @transform_6, window_bounds = array<i64: 1, 16, 128>}]} {
    %c0 = arith.constant 0 : index
    %c0_0 = arith.constant 0 : index
    %0 = vector.load %arg5[%c0, %c0_0] : memref<32x1xf32, #tpu.memory_space<vmem>>, vector<32x1xf32>
    %c0_1 = arith.constant 0 : index
    %c0_2 = arith.constant 0 : index
    %1 = vector.load %arg6[%c0_1, %c0_2] : memref<1x32xf32, #tpu.memory_space<vmem>>, vector<1x32xf32>
    %c0_3 = arith.constant 0 : index
    %c0_4 = arith.constant 0 : index
    %2 = vector.load %arg7[%c0_3, %c0_4] : memref<1x32xf32, #tpu.memory_space<vmem>>, vector<1x32xf32>
    %c0_5 = arith.constant 0 : index
    %3 = memref.load %arg8[%c0_5] : memref<1xf32, #tpu.memory_space<smem>>
    %4 = tpu.iota {dimensions = array<i32: 1>} : vector<16x128xi32>
    %5 = tpu.iota {dimensions = array<i32: 0>} : vector<16x128xi32>
    %cst = arith.constant 1.000000e+00 : bf16
    %6 = vector.broadcast %cst : bf16 to vector<16x1xbf16>
    %c1_i32 = arith.constant 1 : i32
    %7 = arith.muli %arg0, %c1_i32 : i32
    %c0_i32 = arith.constant 0 : i32
    %8 = arith.addi %7, %c0_i32 : i32
    %9 = arith.index_cast %8 : i32 to index
    %10 = memref.load %arg1[%9] : memref<2xi32, #tpu.memory_space<smem>>
    %c1_i32_6 = arith.constant 1 : i32
    %11 = arith.muli %arg0, %c1_i32_6 : i32
    %c0_i32_7 = arith.constant 0 : i32
    %12 = arith.addi %11, %c0_i32_7 : i32
    %13 = arith.index_cast %12 : i32 to index
    %14 = memref.load %arg2[%13] : memref<2xi32, #tpu.memory_space<smem>>
    %c0_8 = arith.constant 0 : index
    %c0_9 = arith.constant 0 : index
    %c0_10 = arith.constant 0 : index
    %15 = vector.load %arg3[%c0_8, %c0_9, %c0_10] : memref<1x16x32xf32, #tpu.memory_space<vmem>>, vector<1x16x32xf32>
    %16 = vector.shape_cast %15 : vector<1x16x32xf32> to vector<16x32xf32>
    %c0_11 = arith.constant 0 : index
    %c0_12 = arith.constant 0 : index
    %c0_13 = arith.constant 0 : index
    %17 = vector.load %arg4[%c0_11, %c0_12, %c0_13] : memref<1x128x32xf32, #tpu.memory_space<vmem>>, vector<1x128x32xf32>
    %18 = vector.shape_cast %17 : vector<1x128x32xf32> to vector<128x32xf32>
    %19 = arith.truncf %16 : vector<16x32xf32> to vector<16x32xbf16>
    %20 = arith.truncf %18 : vector<128x32xf32> to vector<128x32xbf16>
    %cst_14 = arith.constant dense<0.000000e+00> : vector<16x1xf32>
    %21 = tpu.matmul %16, %0, %cst_14 {dimension_numbers = #tpu.dot_dimension_numbers<[1], [0], [0], [1], [0, 0, 1, 1], [], []>} : vector<16x32xf32>, vector<32x1xf32>, vector<16x1xf32> -> vector<16x1xf32>
    %cst_15 = arith.constant dense<0.000000e+00> : vector<1x128xf32>
    %22 = tpu.matmul %1, %18, %cst_15 {dimension_numbers = #tpu.dot_dimension_numbers<[1], [1], [0], [0], [0, 0, 1, 0], [], []>} : vector<1x32xf32>, vector<128x32xf32>, vector<1x128xf32> -> vector<1x128xf32>
    %23 = vector.broadcast %2 : vector<1x32xf32> to vector<128x32xf32>
    %24 = arith.mulf %18, %23 : vector<128x32xf32>
    %cst_16 = arith.constant dense<0.000000e+00> : vector<16x128xf32>
    %25 = tpu.matmul %16, %24, %cst_16 {dimension_numbers = #tpu.dot_dimension_numbers<[1], [1], [0], [0], [0, 0, 1, 0], [], []>} : vector<16x32xf32>, vector<128x32xf32>, vector<16x128xf32> -> vector<16x128xf32>
    %26 = vector.broadcast %21 : vector<16x1xf32> to vector<16x128xf32>
    %27 = arith.addf %25, %26 : vector<16x128xf32>
    %28 = vector.broadcast %22 : vector<1x128xf32> to vector<16x128xf32>
    %29 = arith.addf %27, %28 : vector<16x128xf32>
    %30 = vector.broadcast %3 : f32 to vector<16x128xf32>
    %31 = arith.addf %29, %30 : vector<16x128xf32>
    %32 = vector.broadcast %14 : i32 to vector<16x128xi32>
    %33 = arith.cmpi slt, %4, %32 : vector<16x128xi32>
    %cst_17 = arith.constant -1.000000e+30 : f32
    %34 = vector.broadcast %cst_17 : f32 to vector<16x128xf32>
    %35 = arith.select %33, %31, %34 : vector<16x128xi1>, vector<16x128xf32>
    %cst_18 = arith.constant dense<0xFF800000> : vector<16xf32>
    %36 = vector.multi_reduction <maximumf>, %35, %cst_18 [1] : vector<16x128xf32> to vector<16xf32>
    %37 = vector.shape_cast %36 : vector<16xf32> to vector<16x1xf32>
    %38 = vector.broadcast %37 : vector<16x1xf32> to vector<16x128xf32>
    %39 = arith.subf %35, %38 : vector<16x128xf32>
    %40 = math.exp %39 : vector<16x128xf32>
    %cst_19 = arith.constant dense<0.000000e+00> : vector<16xf32>
    %41 = vector.multi_reduction <add>, %40, %cst_19 [1] : vector<16x128xf32> to vector<16xf32>
    %42 = vector.shape_cast %41 : vector<16xf32> to vector<16x1xf32>
    %43 = arith.truncf %40 : vector<16x128xf32> to vector<16x128xbf16>
    %44 = vector.broadcast %10 : i32 to vector<16x128xi32>
    %45 = arith.cmpi slt, %5, %44 : vector<16x128xi32>
    %cst_20 = arith.constant -1.000000e+30 : f32
    %46 = vector.broadcast %cst_20 : f32 to vector<16x128xf32>
    %47 = arith.select %45, %31, %46 : vector<16x128xi1>, vector<16x128xf32>
    %cst_21 = arith.constant dense<0xFF800000> : vector<128xf32>
    %48 = vector.multi_reduction <maximumf>, %47, %cst_21 [0] : vector<16x128xf32> to vector<128xf32>
    %49 = vector.shape_cast %48 : vector<128xf32> to vector<1x128xf32>
    %50 = vector.broadcast %49 : vector<1x128xf32> to vector<16x128xf32>
    %51 = arith.subf %47, %50 : vector<16x128xf32>
    %52 = math.exp %51 : vector<16x128xf32>
    %53 = arith.truncf %52 : vector<16x128xf32> to vector<16x128xbf16>
    %cst_22 = arith.constant dense<0.000000e+00> : vector<128x32xf32>
    %54 = tpu.matmul %53, %19, %cst_22 {dimension_numbers = #tpu.dot_dimension_numbers<[0], [0], [1], [1], [0, 1, 1, 1], [], []>} : vector<16x128xbf16>, vector<16x32xbf16>, vector<128x32xf32> -> vector<128x32xf32>
    %cst_23 = arith.constant dense<0.000000e+00> : vector<128x1xf32>
    %55 = tpu.matmul %53, %6, %cst_23 {dimension_numbers = #tpu.dot_dimension_numbers<[0], [0], [1], [1], [0, 1, 1, 1], [], []>} : vector<16x128xbf16>, vector<16x1xbf16>, vector<128x1xf32> -> vector<128x1xf32>
    %56 = tpu.reciprocal %55 {approx = true} : vector<128x1xf32> -> vector<128x1xf32>
    %57 = vector.broadcast %56 : vector<128x1xf32> to vector<128x32xf32>
    %58 = arith.mulf %54, %57 : vector<128x32xf32>
    %59 = arith.truncf %58 : vector<128x32xf32> to vector<128x32xbf16>
    %60 = tpu.concatenate %20, %59 in 1 : vector<128x32xbf16>, vector<128x32xbf16> -> vector<128x64xbf16>
    %cst_24 = arith.constant dense<0.000000e+00> : vector<16x64xf32>
    %61 = tpu.matmul %43, %60, %cst_24 {dimension_numbers = #tpu.dot_dimension_numbers<[1], [0], [0], [1], [0, 0, 1, 1], [], []>} : vector<16x128xbf16>, vector<128x64xbf16>, vector<16x64xf32> -> vector<16x64xf32>
    %62 = tpu.reciprocal %42 {approx = true} : vector<16x1xf32> -> vector<16x1xf32>
    %63 = vector.broadcast %62 : vector<16x1xf32> to vector<16x64xf32>
    %64 = arith.mulf %61, %63 : vector<16x64xf32>
    %65 = vector.extract_strided_slice %64 {offsets = [0, 0], sizes = [16, 32], strides = [1, 1]} : vector<16x64xf32> to vector<16x32xf32>
    %66 = vector.extract_strided_slice %64 {offsets = [0, 32], sizes = [16, 32], strides = [1, 1]} : vector<16x64xf32> to vector<16x32xf32>
    %c0_25 = arith.constant 0 : index
    %c0_26 = arith.constant 0 : index
    %c0_27 = arith.constant 0 : index
    %67 = vector.load %arg9[%c0_25, %c0_26, %c0_27] : memref<1x16x128xf32, #tpu.memory_space<vmem>>, vector<1x16x32xf32>
    %68 = vector.shape_cast %67 : vector<1x16x32xf32> to vector<16x32xf32>
    %69 = vector.shape_cast %16 : vector<16x32xf32> to vector<1x16x32xf32>
    tpu.vector_store %arg9[%c0_25, %c0_26, %c0_27], %69 {strides = array<i32>} : memref<1x16x128xf32, #tpu.memory_space<vmem>>, vector<1x16x32xf32>,
    %c0_28 = arith.constant 0 : index
    %c0_29 = arith.constant 0 : index
    %c32 = arith.constant 32 : index
    %70 = vector.load %arg9[%c0_28, %c0_29, %c32] : memref<1x16x128xf32, #tpu.memory_space<vmem>>, vector<1x16x32xf32>
    %71 = vector.shape_cast %70 : vector<1x16x32xf32> to vector<16x32xf32>
    %72 = vector.shape_cast %65 : vector<16x32xf32> to vector<1x16x32xf32>
    tpu.vector_store %arg9[%c0_28, %c0_29, %c32], %72 {strides = array<i32>} : memref<1x16x128xf32, #tpu.memory_space<vmem>>, vector<1x16x32xf32>,
    %73 = arith.mulf %16, %65 : vector<16x32xf32>
    %c0_30 = arith.constant 0 : index
    %c0_31 = arith.constant 0 : index
    %c64 = arith.constant 64 : index
    %74 = vector.load %arg9[%c0_30, %c0_31, %c64] : memref<1x16x128xf32, #tpu.memory_space<vmem>>, vector<1x16x32xf32>
    %75 = vector.shape_cast %74 : vector<1x16x32xf32> to vector<16x32xf32>
    %76 = vector.shape_cast %73 : vector<16x32xf32> to vector<1x16x32xf32>
    tpu.vector_store %arg9[%c0_30, %c0_31, %c64], %76 {strides = array<i32>} : memref<1x16x128xf32, #tpu.memory_space<vmem>>, vector<1x16x32xf32>,
    %77 = arith.mulf %16, %66 : vector<16x32xf32>
    %c0_32 = arith.constant 0 : index
    %c0_33 = arith.constant 0 : index
    %c96 = arith.constant 96 : index
    %78 = vector.load %arg9[%c0_32, %c0_33, %c96] : memref<1x16x128xf32, #tpu.memory_space<vmem>>, vector<1x16x32xf32>
    %79 = vector.shape_cast %78 : vector<1x16x32xf32> to vector<16x32xf32>
    %80 = vector.shape_cast %77 : vector<16x32xf32> to vector<1x16x32xf32>
    tpu.vector_store %arg9[%c0_32, %c0_33, %c96], %80 {strides = array<i32>} : memref<1x16x128xf32, #tpu.memory_space<vmem>>, vector<1x16x32xf32>,
    return
  }
  func.func @transform_0(%arg0: i32, %arg1: memref<2xi32, #tpu.memory_space<smem>>, %arg2: memref<2xi32, #tpu.memory_space<smem>>) -> (i32, i32, i32) {
    %c0_i32 = arith.constant 0 : i32
    %c0_i32_0 = arith.constant 0 : i32
    %c0_i32_1 = arith.constant 0 : i32
    return %arg0, %c0_i32, %c0_i32_0 : i32, i32, i32
  }
  func.func @transform_1(%arg0: i32, %arg1: memref<2xi32, #tpu.memory_space<smem>>, %arg2: memref<2xi32, #tpu.memory_space<smem>>) -> (i32, i32, i32) {
    %c0_i32 = arith.constant 0 : i32
    %c0_i32_0 = arith.constant 0 : i32
    %c0_i32_1 = arith.constant 0 : i32
    return %arg0, %c0_i32, %c0_i32_0 : i32, i32, i32
  }
  func.func @transform_2(%arg0: i32, %arg1: memref<2xi32, #tpu.memory_space<smem>>, %arg2: memref<2xi32, #tpu.memory_space<smem>>) -> (i32, i32) {
    %c0_i32 = arith.constant 0 : i32
    %c0_i32_0 = arith.constant 0 : i32
    %c0_i32_1 = arith.constant 0 : i32
    return %c0_i32, %c0_i32_0 : i32, i32
  }
  func.func @transform_3(%arg0: i32, %arg1: memref<2xi32, #tpu.memory_space<smem>>, %arg2: memref<2xi32, #tpu.memory_space<smem>>) -> (i32, i32) {
    %c0_i32 = arith.constant 0 : i32
    %c0_i32_0 = arith.constant 0 : i32
    %c0_i32_1 = arith.constant 0 : i32
    return %c0_i32, %c0_i32_0 : i32, i32
  }
  func.func @transform_4(%arg0: i32, %arg1: memref<2xi32, #tpu.memory_space<smem>>, %arg2: memref<2xi32, #tpu.memory_space<smem>>) -> (i32, i32) {
    %c0_i32 = arith.constant 0 : i32
    %c0_i32_0 = arith.constant 0 : i32
    %c0_i32_1 = arith.constant 0 : i32
    return %c0_i32, %c0_i32_0 : i32, i32
  }
  func.func @transform_5(%arg0: i32, %arg1: memref<2xi32, #tpu.memory_space<smem>>, %arg2: memref<2xi32, #tpu.memory_space<smem>>) -> i32 {
    %c0_i32 = arith.constant 0 : i32
    %c0_i32_0 = arith.constant 0 : i32
    return %c0_i32 : i32
  }
  func.func @transform_6(%arg0: i32, %arg1: memref<2xi32, #tpu.memory_space<smem>>, %arg2: memref<2xi32, #tpu.memory_space<smem>>) -> (i32, i32, i32) {
    %c0_i32 = arith.constant 0 : i32
    %c0_i32_0 = arith.constant 0 : i32
    %c0_i32_1 = arith.constant 0 : i32
    return %arg0, %c0_i32, %c0_i32_0 : i32, i32, i32
  }
}

</mosaic_0001>

<bundles_post_ra>
// kernel: tpu_custom_call.1
= control target key start
LH: loop header
LB: loop body
LE: loop exit
PB: predicated region body
PF: predicated region fallthrough
CT: control target
= control target key end

     0   :  { %s2334_s0 = inlined_call_operand.vmem [shape: s32[2], index: 0, kind: input, shape index: {}]   ;;  %s2335_s2 = inlined_call_operand.vmem [shape: f32[2,16,32], index: 2, kind: input, shape index: {}]   ;;  %s2336_s3 = inlined_call_operand.vmem [shape: f32[2,128,32], index: 3, kind: input, shape index: {}]   ;;  %s2337_s4 = inlined_call_operand.vmem [shape: f32[32,1], index: 4, kind: input, shape index: {}]   ;;  %s2338_s5 = inlined_call_operand.vmem [shape: f32[1,32], index: 5, kind: input, shape index: {}]   ;;  %s2339_s6 = inlined_call_operand.vmem [shape: f32[1,32], index: 6, kind: input, shape index: {}]   ;;  %s2340_s8 = inlined_call_operand.hbm [shape: f32[2,16,128], index: 8, kind: output, shape index: {}]   ;;  %s2341_s1 = inlined_call_operand.vmem [shape: s32[2], index: 1, kind: input, shape index: {}]   ;;  %s2342_s7 = inlined_call_operand.<no memory space> [shape: f32[1], index: 7, kind: input, shape index: {}]  }
   0x1   :  { %s13_s29 = sshll.u32 %s2334_s0, 4  ;;  %s17_s10 = sshll.u32 %s2341_s1, 4  ;;  %s14_s29 = int_to_ptr.vmem [resolvable:$true] %s13_s29  ;;  %s18_s10 = int_to_ptr.vmem [resolvable:$true] %s17_s10 }
   0x2   :  { %s1781_s11 = scalar_lea.vmem %s14_s29, 16  ;;  %p1786_p1 = scmp.lt.s32.totalorder %s14_s29, %s14_s29 }
   0x3   :  { %p1782_p0 = scmp.ne.s32.totalorder %s14_s29, %s1781_s11  ;;  %p1787_p2 = scmp.lt.s32.totalorder %s1781_s11, %s1781_s11 }
   0x5   :  { %p1788_p3 = por %p1787_p2, %p1786_p1 }
   0x7   :  { %p1789_p4 = pnand %p1788_p3, %p1782_p0 }
   0x9   :  { %1792 = shalt.err (!%p1789_p4)  }
   0xa   :  { %s1871_s12 = smov [#allocation3]   ;;  %s1793_s13 = scalar_lea.vmem %s18_s10, 16 }
   0xb   :  { %16 = dma.vmem_to_smem %s14_s29, 16, %s1871_s12, [#allocation2] }
   0xc   :  { %p1794_p5 = scmp.ne.s32.totalorder %s18_s10, %s1793_s13  ;;  %p1798_p6 = scmp.lt.s32.totalorder %s18_s10, %s18_s10 }
   0xd   :  { %p1799_p7 = scmp.lt.s32.totalorder %s1793_s13, %s1793_s13 }
   0xf   :  { %p1800_p8 = por %p1799_p7, %p1798_p6 }
  0x11   :  { %p1801_p9 = pnand %p1800_p8, %p1794_p5 }
  0x13   :  { %1804 = shalt.err (!%p1801_p9)  }
  0x14   :  { %s1872_s0 = smov [#allocation4]   ;;  %21 = sst [smem:[#allocation5]] %s2342_s7 }
  0x15   :  { %20 = dma.vmem_to_smem %s18_s10, 16, %s1872_s0, [#allocation2] }
  0x16   :  { %1849 = dma.done.wait [#allocation2], 32 }
  0x17   :  { %1850 = vsyncadd [#allocation2], 4294967264 }
  0x18   :  { %23 = sfence }
  0x19   :  { %24 = vsyncpa [#allocation7], 0 }
  0x1a   :  { %26 = vsyncpa [#allocation7 + $0x1], 0  ;;  %s1938_s15 = smov 0   ;;  %s1940_s16 = smov 0  }
  0x1b   :  { %s1942_s17 = smov 0   ;;  %s1944_s18 = smov 0  }
  0x1c LB: > { %s1959_s7 = sadd.s32 4294967295, %s1869_s18   ;;  %s1320_s19 = sadd.s32 4294967294, %s1869_s18   ;;  %s1869_s18 = sphi %s1944_s18, %s2350_s18   ;;  %s1865_s17 = sphi %s1942_s17, %s2349_s17   ;;  %s1861_s16 = sphi %s1940_s16, %s2348_s16   ;;  %s1857_s15 = sphi %s1938_s15, %s2347_s15  }
  0x1d   : > { %s1963_s20 = sadd.s32 1, %s1869_s18   ;;  %s175_s21 = sadd.s32 1, %s1865_s17 }
  0x1e   : > { %s172_s22 = ssub.s32 %s1869_s18, %s1963_s20  ;;  %p185_p10 = scmp.ne.s32.totalorder %s1865_s17, %s1861_s16 }
  0x1f   : > { %p173_p11 = scmp.eq.s32.totalorder %s172_s22, 0  ;;  %p186_p12 = scmp.eq.s32.totalorder %s1959_s7, 1 }
  0x20   : > { %p191_p13 = scmp.ne.s32.totalorder %s1861_s16, %s1857_s15  ;;  %p192_p0 = scmp.eq.s32.totalorder %s1320_s19, 1 }
  0x21   : > { %s1974_s23 = scalar_select %p173_p11, %s1865_s17, %s175_s21  }
  0x22   : > { %p1976_p1 = por %p186_p12, %p185_p10  ;;  %p1980_p2 = por %p192_p0, %p191_p13 }
  0x23   : > { %p1323_p3 = scmp.ge.s32.totalorder %s1869_s18, 1  ;;  %p238_p4 = scmp.lt.s32.totalorder %s1869_s18, 3 }
  0x25   : > { %p239_p5 = pnand %p1323_p3, %p238_p4 }
  0x26   : > { %v285_v0 = vld [vmem:[%s2337_s4] sm:$0xff] (!%p239_p5)  ;;  %v286_v1 = vld [vmem:[%s2337_s4 + $0x8] sm:$0xff] (!%p239_p5)  ;;  %v287_v2 = vld [vmem:[%s2337_s4 + $0x10] sm:$0xff] (!%p239_p5)  ;;  %p273_p6 = scmp.lt.s32.totalorder (!%p239_p5), %s1959_s7, 1  ;;  %v1873_v5 = vmov (!%p239_p5), 0.0|0.0   ;;  %vm1874_vm0 = vmmov (!%p239_p5), 0  }
  0x27   : > { %242 = sbr.rel (%p239_p5) target bundleno = 1524 (0x5f4), region = 44  ;;  %v1596_v3 = vpack.c.bf16 (!%p239_p5), %v286_v1, %v285_v0  ;;  %v288_v4 = vld [vmem:[%s2337_s4 + $0x18] sm:$0xff] (!%p239_p5)  ;;  %1604 = vmatprep.subr.bf16.mxu1 (!%p239_p5), %v1873_v5  ;;  %v1875_v7 = vmov (!%p239_p5), 0.0   ;;  %vm326_vm1 = vcmask (!%p239_p5), 261120   ;;  %v2006_v8 = vld [vmem:[%s2339_s6] ss:$0 sm:$0xff] (!%p239_p5) }
  0x28   : > { %v1600_v6 = vpack.c.bf16 (!%p239_p5), %v288_v4, %v287_v2  ;;  %1502 = vmatprep.mubr.msk.f32.mxu1 (!%p239_p5), %vm1874_vm0, %v1875_v7  ;;  %vm2032_vm2 = vmpackc.low (!%p239_p5), %vm326_vm1, %vm326_vm1  ;;  %v289_v60 = vld [vmem:[%s2338_s5] sm:$0x1] (!%p239_p5)  ;;  %v1876_v61 = vmov (!%p239_p5), 0   ;;  %v292_v4 = vlaneseq (!%p239_p5)  ;;  %s298_s9 = sld [smem:[#allocation4 + %s1959_s7]] (!%p239_p5)  ;;  %vm747_vm6 = vcmask (!%p239_p5), 130048   ;;  %s1879_s14 = smov (!%p239_p5), 96  }
  0x29   : > { %1597 = vmatprep.subr.bf16.mxu0 (!%p239_p5), %v1596_v3  ;;  %1735 = vset.pattern.permute.xlu0 (!%p239_p5), %v1876_v61  ;;  %s291_s10 = sld [smem:[#allocation5]] (!%p239_p5)  ;;  %s1880_s19 = smov (!%p239_p5), 64   ;;  %vm1197_vm7 = vcmask (!%p239_p5), 523520   ;;  %vm1210_vm8 = vcmask (!%p239_p5), 785920   ;;  %vm1229_vm9 = vcmask (!%p239_p5), 1048320  }
  0x2a   : > { %1599 = vmatpush3.bf16.msra.mxu0 (!%p239_p5), %v1596_v3  ;;  %s297_s11 = sld [smem:[#allocation3 + %s1959_s7]] (!%p239_p5)  ;;  %s1390_s21 = sshll.u32 (!%p239_p5), %s1959_s7, 8 }
  0x2b   : > { %1601 = vmatprep.subr.bf16.mxu0 (!%p239_p5), %v1600_v6  ;;  %s1881_s30 = smov (!%p239_p5), [#allocation6]  }
  0x2e   : > { %s274_s12 = scalar_select %p273_p6, %s1959_s7, 1  ;;  %1603 = vmatpush3.bf16.msra.mxu0 %v1600_v6 }
  0x30   : > { %s1388_s13 = sshll.u32 %s274_s12, 4  ;;  %s1389_s0 = sshll.u32 %s274_s12, 7 }
  0x31   : > { %s277_s22 = scalar_lea.vmem %s2335_s2, %s1388_s13  ;;  %s2014_s28 = scalar_lea.vmem %s2336_s3, %s1389_s0 }
  0x32   : > { %v2016_v9 = vld [vmem:[%s277_s22] sm:$0xff]  ;;  %v302_v11 = vld [vmem:[%s2014_s28 + $0x8] sm:$0xff]  ;;  %v303_v13 = vld [vmem:[%s2014_s28 + $0x10] sm:$0xff]  ;;  %s1878_s12 = smov 32   ;;  %s270_s13 = sand.u32 1, %s1861_s16  }
  0x33   : > { %v301_v10 = vld [vmem:[%s2014_s28] sm:$0xff]  ;;  %1467 = vmatprep.mubr.msk.f32.mxu0 %vm326_vm1, %v2016_v9  ;;  %v304_v14 = vld [vmem:[%s2014_s28 + $0x18] sm:$0xff]  ;;  %v2025_v15 = vld [vmem:[%s277_s22 + $0x8] sm:$0xff]  ;;  %v536_v16 = vmul.f32 %v2006_v8, %v302_v11  ;;  %v537_v20 = vmul.f32 %v2006_v8, %v303_v13  ;;  %s1324_s0 = sshll.u32 %s270_s13, 4  ;;  %s2293_s29 = scalar_lea.sflag [#allocation7], %s270_s13 }
  0x34   : > { %v535_v12 = vmul.f32 %v2006_v8, %v301_v10  ;;  %v2028_v17 = vpack.c.bf16 %v302_v11, %v301_v10  ;;  %v538_v21 = vmul.f32 %v2006_v8, %v304_v14  ;;  %1468 = vmatmul.mubr.msk.f32.vlgmr.msra.gmra.mrb[0].mxu0 %vm326_vm1, %v2025_v15  ;;  %v2048_v23 = vpack.c.bf16 %v304_v14, %v303_v13  ;;  %v305_v24 = vld [vmem:[%s2014_s28 + $0x20] sm:$0xff]  ;;  %v306_v25 = vld [vmem:[%s2014_s28 + $0x28] sm:$0xff]  ;;  %v307_v30 = vld [vmem:[%s2014_s28 + $0x30] sm:$0xff]  ;;  %s2262_s1 = scalar_lea.vmem [#allocation6], %s1324_s0 }
  0x35   : > { %1537 = vmatprep.mubr.msk.f32.mxu0 %vm326_vm1, %v2016_v9  ;;  %v539_v26 = vmul.f32 %v2006_v8, %v305_v24  ;;  %v540_v27 = vmul.f32 %v2006_v8, %v306_v25  ;;  %v2062_v29 = vpack.c.bf16 %v306_v25, %v305_v24  ;;  %v308_v31 = vld [vmem:[%s2014_s28 + $0x38] sm:$0xff]  ;;  %v541_v32 = vmul.f32 %v2006_v8, %v307_v30  ;;  %v309_v36 = vld [vmem:[%s2014_s28 + $0x40] sm:$0xff]  ;;  %v310_v37 = vld [vmem:[%s2014_s28 + $0x48] sm:$0xff]  ;;  %s1246_s22 = sshll.u32 %s2262_s1, 4  ;;  %s2287_s22 = int_to_ptr.vmem [resolvable:$true] %s1246_s22 }
  0x36   : > { %v1636_v19 = vpack.c.bf16 %v536_v16, %v535_v12  ;;  %1607 = vmatpush3.bf16.xpose.msk.msra.mxu1 %vm2032_vm2, %v2028_v17  ;;  %v1642_v22 = vpack.c.bf16 %v538_v21, %v537_v20  ;;  %v542_v33 = vmul.f32 %v2006_v8, %v308_v31  ;;  %v2076_v35 = vpack.c.bf16 %v308_v31, %v307_v30  ;;  %v311_v42 = vld [vmem:[%s2014_s28 + $0x50] sm:$0xff]  ;;  %v312_v43 = vld [vmem:[%s2014_s28 + $0x58] sm:$0xff]  ;;  %v313_v48 = vld [vmem:[%s2014_s28 + $0x60] sm:$0xff]  ;;  %s1805_s7 = scalar_lea.vmem %s2287_s22, 256 }
  0x37   : > { %1608 = vmatprep.subr.bf16.mxu1 %v1873_v5  ;;  %v1648_v28 = vpack.c.bf16 %v540_v27, %v539_v26  ;;  %v543_v38 = vmul.f32 %v2006_v8, %v309_v36  ;;  %v544_v39 = vmul.f32 %v2006_v8, %v310_v37  ;;  %v2090_v41 = vpack.c.bf16 %v310_v37, %v309_v36  ;;  %v314_v49 = vld [vmem:[%s2014_s28 + $0x68] sm:$0xff]  ;;  %v315_v54 = vld [vmem:[%s2014_s28 + $0x70] sm:$0xff]  ;;  %v316_v55 = vld [vmem:[%s2014_s28 + $0x78] sm:$0xff]  ;;  %s2285_s28 = scalar_lea.hbm %s2340_s8, %s1390_s21  ;;  %p1806_p7 = scmp.ne.s32.totalorder %s2287_s22, %s1805_s7 }
  0x38   : > { %1638 = vmatprep.subr.msk.bf16.mxu0 %vm2032_vm2, %v1636_v19  ;;  %v1654_v34 = vpack.c.bf16 %v542_v33, %v541_v32  ;;  %v545_v44 = vmul.f32 %v2006_v8, %v311_v42  ;;  %v546_v45 = vmul.f32 %v2006_v8, %v312_v43  ;;  %v2104_v47 = vpack.c.bf16 %v312_v43, %v311_v42 }
  0x39   : > { %1641 = vmatpush3.bf16.xpose.msk.msra.mxu0 %vm2032_vm2, %v1636_v19  ;;  %v1660_v40 = vpack.c.bf16 %v544_v39, %v543_v38  ;;  %v547_v50 = vmul.f32 %v2006_v8, %v313_v48  ;;  %v548_v51 = vmul.f32 %v2006_v8, %v314_v49  ;;  %v2118_v53 = vpack.c.bf16 %v314_v49, %v313_v48  ;;  %p1807_p8 = pnand %p1806_p7, %p1976_p1 }
  0x3a   : > { %1644 = vmatprep.subr.msk.bf16.mxu0 %vm2032_vm2, %v1642_v22  ;;  %v1666_v46 = vpack.c.bf16 %v546_v45, %v545_v44  ;;  %v549_v56 = vmul.f32 %v2006_v8, %v315_v54  ;;  %v550_v57 = vmul.f32 %v2006_v8, %v316_v55  ;;  %v2132_v59 = vpack.c.bf16 %v316_v55, %v315_v54 }
  0x3b   : > { %v1672_v52 = vpack.c.bf16 %v548_v51, %v547_v50  ;;  %v293_v11 = vand.u32 127, %v292_v4  ;;  %v693_v13 = vstv %s298_s9  ;;  %v690_v14 = vstv %s291_s10  ;;  %1187 = vst.msk [vmem:[%s2262_s1] sm:$0xff] %vm326_vm1, %v2016_v9  ;;  %1188 = vst.msk [vmem:[%s2262_s1 + $0x8] sm:$0xff] %vm326_vm1, %v2025_v15  ;;  %p1808_p9 = pneg %p1807_p8  ;;  %s1809_s9 = sshll.u32 %s1881_s30, 4  ;;  %s1810_s9 = int_to_ptr.vmem [resolvable:$false] %s1809_s9 }
  0x3c   : > { %v1678_v58 = vpack.c.bf16 %v550_v57, %v549_v56  ;;  %v712_v21 = vstv %s297_s11  ;;  %v1877_v37 = vmov 1065369472   ;;  %s1811_s10 = scalar_lea.vmem %s1810_s9, 512  ;;  %p1812_p10 = scmp.lt.s32.totalorder %s2287_s22, %s1810_s9 }
  0x3d   : > { %vm694_vm3 = vcmp.lt.s32.totalorder %v293_v11, %v693_v13  ;;  %p1813_p11 = scmp.lt.s32.totalorder %s1811_s10, %s1805_s7 }
  0x3e   : > { %1611 = vmatpush3.bf16.xpose.msk.msra.mxu1 %vm2032_vm2, %v2048_v23 }
  0x3f   : > { %1612 = vmatprep.subr.bf16.mxu1 %v1873_v5  ;;  %p1814_p12 = por %p1813_p11, %p1812_p10 }
  0x41   : > { %1647 = vmatpush3.bf16.xpose.msk.msra.mxu0 %vm2032_vm2, %v1642_v22  ;;  %p1815_p13 = pnand %p1814_p12, %p1808_p9 }
  0x42   : > { %1650 = vmatprep.subr.msk.bf16.mxu0 %vm2032_vm2, %v1648_v28 }
  0x46   : > { %1615 = vmatpush3.bf16.xpose.msk.msra.mxu1 %vm2032_vm2, %v2062_v29 }
  0x47   : > { %1616 = vmatprep.subr.bf16.mxu1 %v1873_v5 }
  0x49   : > { %1653 = vmatpush3.bf16.xpose.msk.msra.mxu0 %vm2032_vm2, %v1648_v28 }
  0x4a   : > { %1656 = vmatprep.subr.msk.bf16.mxu0 %vm2032_vm2, %v1654_v34 }
  0x4e   : > { %1619 = vmatpush3.bf16.xpose.msk.msra.mxu1 %vm2032_vm2, %v2076_v35 }
  0x4f   : > { %1620 = vmatprep.subr.bf16.mxu1 %v1873_v5 }
  0x51   : > { %1659 = vmatpush3.bf16.xpose.msk.msra.mxu0 %vm2032_vm2, %v1654_v34  ;;  %v317_v34 = vpack.c.bf16 %v2025_v15, %v2016_v9 }
  0x52   : > { %1662 = vmatprep.subr.msk.bf16.mxu0 %vm2032_vm2, %v1660_v40 }
  0x56   : > { %1623 = vmatpush3.bf16.xpose.msk.msra.mxu1 %vm2032_vm2, %v2090_v41 }
  0x57   : > { %1624 = vmatprep.subr.bf16.mxu1 %v1873_v5 }
  0x59   : > { %1665 = vmatpush3.bf16.xpose.msk.msra.mxu0 %vm2032_vm2, %v1660_v40 }
  0x5a   : > { %1668 = vmatprep.subr.msk.bf16.mxu0 %vm2032_vm2, %v1666_v46 }
  0x5e   : > { %1627 = vmatpush3.bf16.xpose.msk.msra.mxu1 %vm2032_vm2, %v2104_v47 }
  0x5f   : > { %1628 = vmatprep.subr.bf16.mxu1 %v1873_v5 }
  0x61   : > { %1671 = vmatpush3.bf16.xpose.msk.msra.mxu0 %vm2032_vm2, %v1666_v46 }
  0x62   : > { %1674 = vmatprep.subr.msk.bf16.mxu0 %vm2032_vm2, %v1672_v52 }
  0x66   : > { %1631 = vmatpush3.bf16.xpose.msk.msra.mxu1 %vm2032_vm2, %v2118_v53 }
  0x67   : > { %1632 = vmatprep.subr.bf16.mxu1 %v1873_v5  ;;  %v295_v5 = vshrl.u32 %v292_v4, 7 }
  0x69   : > { %1677 = vmatpush3.bf16.xpose.msk.msra.mxu0 %vm2032_vm2, %v1672_v52  ;;  %v686_v6 = vsub.s32 0, %v295_v5  ;;  %v296_v18 = vadd.s32 8, %v295_v5  ;;  %vm713_vm4 = vcmp.lt.s32.totalorder %v295_v5, %v712_v21 }
  0x6a   : > { %1680 = vmatprep.subr.msk.bf16.mxu0 %vm2032_vm2, %v1678_v58 }
  0x6b   : > { %vm714_vm5 = vcmp.lt.s32.totalorder %v296_v18, %v712_v21 }
  0x6e   : > { %1635 = vmatpush3.bf16.xpose.msk.msra.mxu1 %vm2032_vm2, %v2132_v59 }
  0x6f   : > { %1540 = vmatprep.subr.bf16.mxu1 %v317_v34 }
  0x71   : > { %1683 = vmatpush3.bf16.xpose.msk.msra.mxu0 %vm2032_vm2, %v1678_v58 }
  0x72   : > { %1558 = vmatprep.subr.bf16.mxu0 %v1877_v37 }
  0x75   : > { %1503 = vmatmul.mubr.msk.f32.vlgmr.msra.gmra.mrb[0].mxu1 %vm326_vm1, %v289_v60 }
  0x76   : > { %1541 = vmatpush3.bf16.msra.mxu1 %v317_v34 }
  0x77   : > { %1576 = vmatprep.subr.bf16.mxu1 %v1875_v7 }
  0x78   : > { %1538 = vmatmul.mubr.msk.f32.vlgmr.msra.gmra.mrb[2].mxu0 %vm326_vm1, %v2025_v15 }
  0x79   : > { %1559 = vmatpush3.bf16.msra.mxu0 %v1877_v37 }
 0x107   : > { %v1469_v62 = vpop.f32.mrb[0].mxu0 }
 0x108   : > { %v399_v63 = vpop.f32.mrb[1].mxu0 }
 0x109   : > { %553 = vperm.xlu0 %1735, %v399_v63  }
 0x10d   : > { %558 = vperm.xlu0 %1735, %v1469_v62  }
 0x148   : > { %v525_v0 = vpop.f32.mrb[0].mxu1 }
 0x149   : > { %v1504_v1 = vpop.f32.mrb[1].mxu1  ;;  %v687_v8 = vrot.slane %v525_v0, %v686_v6 }
 0x14b   : > { %v1539_v2 = vpop.f32.mrb[2].mxu0 }
 0x14c   : > { %v675_v3 = vpop.f32.mrb[3].mxu0 }
 0x188   : > { %v554_v10 = vpop.permute.xlu0 %553 }
 0x189   : > { %v676_v12 = vadd.f32 %v675_v3, %v554_v10 }
 0x18b   : > { %v688_v16 = vadd.f32 %v687_v8, %v676_v12 }
 0x18c   : > { %v559_v19 = vpop.permute.xlu0 %558 }
 0x18d   : > { %v691_v20 = vadd.f32 %v690_v14, %v688_v16  ;;  %v681_v22 = vadd.f32 %v1539_v2, %v559_v19 }
 0x18f   : > { %v689_v24 = vadd.f32 %v687_v8, %v681_v22  ;;  %v2151_v25 = vsel %vm694_vm3, %v691_v20, -1e+30  ;;  %v715_v27 = vsel %vm713_vm4, %v691_v20, -1e+30 }
 0x191   : > { %v692_v26 = vadd.f32 %v690_v14, %v689_v24 }
 0x193   : > { %v716_v28 = vsel %vm714_vm5, %v692_v26, -1e+30  ;;  %v2153_v30 = vsel %vm694_vm3, %v692_v26, -1e+30 }
 0x194   : > { %v717_v31 = vmax.f32 %v715_v27, %v716_v28 }
 0x196   : > { %v718_v32 = vrot.slane %v717_v31, 4 }
 0x198   : > { %v719_v33 = vmax.f32 %v717_v31, %v718_v32 }
 0x19a   : > { %v720_v36 = vrot.slane %v719_v33, 2 }
 0x19c   : > { %v721_v38 = vmax.f32 %v719_v33, %v720_v36 }
 0x19e   : > { %v722_v39 = vrot.slane %v721_v38, 1 }
 0x1a0   : > { %v723_v40 = vmax.f32 %v721_v38, %v722_v39 }
 0x1a2   : > { %v724_v42 = vsub.f32 %v715_v27, %v723_v40  ;;  %v725_v43 = vsub.f32 %v716_v28, %v723_v40 }
 0x1a4   : > { %v728_v44 = vmul.f32 1.442695, %v725_v43  ;;  %v726_v45 = vmul.f32 1.442695, %v724_v42 }
 0x1a6   : > { %1737 = vpow2.f32 %v728_v44 }
 0x1a7   : > { %1739 = vpow2.f32 %v726_v45 }
 0x1b0   : > { %v1738_v46 = vpop.eup %1737 }
 0x1b1   : > { %v1740_v48 = vpop.eup %1739 }
 0x1b2   : > { %v730_v49 = vpack.c.bf16 %v1738_v46, %v1740_v48 }
 0x1b4   : > { %731 = vxpose.xlu1.c.b16.start.end [1/1] (short) %v730_v49, 128 }
 0x1b8   : > { %1736 = vset.pattern.permute.xlu1 %v1876_v61 }
 0x21a   : > { %v739_v50 = vpop.trf.xlu1 }
 0x21b   : > { %1542 = vmatprep.mubr.msk.bf16.mxu1 %vm747_vm6, %v739_v50  ;;  %1560 = vmatprep.mubr.msk.bf16.mxu0 %vm747_vm6, %v739_v50 }
 0x21e   : > { %v740_v51 = vpop.trf.xlu1 }
 0x21f   : > { %1543 = vmatmul.mubr.msk.bf16.vlgmr.msra.gmra.mrb[4].mxu1 %vm747_vm6, %v740_v51  ;;  %1561 = vmatmul.mubr.msk.bf16.vlgmr.msra.gmra.mrb[4].mxu0 %vm747_vm6, %v740_v51 }
 0x222   : > { %v741_v52 = vpop.trf.xlu1 }
 0x223   : > { %1564 = vmatprep.mubr.msk.bf16.mxu0 %vm747_vm6, %v741_v52  ;;  %1546 = vmatprep.mubr.msk.bf16.mxu1 %vm747_vm6, %v741_v52 }
 0x226   : > { %v742_v54 = vpop.trf.xlu1 }
 0x227   : > { %1565 = vmatmul.mubr.msk.bf16.gmra.mrb[8].mxu0 %vm747_vm6, %v742_v54  ;;  %1547 = vmatmul.mubr.msk.bf16.gmra.mrb[8].mxu1 %vm747_vm6, %v742_v54 }
 0x22a   : > { %v743_v55 = vpop.trf.xlu1 }
 0x22b   : > { %1568 = vmatprep.mubr.msk.bf16.mxu0 %vm747_vm6, %v743_v55  ;;  %1550 = vmatprep.mubr.msk.bf16.mxu1 %vm747_vm6, %v743_v55 }
 0x22e   : > { %v744_v56 = vpop.trf.xlu1 }
 0x22f   : > { %1569 = vmatmul.mubr.msk.bf16.gmra.mrb[12].mxu0 %vm747_vm6, %v744_v56  ;;  %1551 = vmatmul.mubr.msk.bf16.gmra.mrb[12].mxu1 %vm747_vm6, %v744_v56 }
 0x232   : > { %v745_v57 = vpop.trf.xlu1 }
 0x233   : > { %1572 = vmatprep.mubr.msk.bf16.mxu0 %vm747_vm6, %v745_v57  ;;  %1554 = vmatprep.mubr.msk.bf16.mxu1 %vm747_vm6, %v745_v57 }
 0x236   : > { %v746_v58 = vpop.trf.xlu1 }
 0x237   : > { %1573 = vmatmul.mubr.msk.bf16.gmra.mrb[16].mxu0 %vm747_vm6, %v746_v58  ;;  %1555 = vmatmul.mubr.msk.bf16.gmra.mrb[16].mxu1 %vm747_vm6, %v746_v58 }
 0x238   : > { %1592 = vmatprep.mubr.msk.bf16.mxu1 %vm1874_vm0, %v1875_v7 }
 0x2f2   : > { %v2176_v60 = vpop.f32.mrb[4].mxu1  ;;  %v1562_v61 = vpop.f32.mrb[4].mxu0 }
 0x2f3   : > { %1741 = vrcp.f32 %v1562_v61  ;;  %v2178_v62 = vpop.f32.mrb[5].mxu1  ;;  %v903_v63 = vpop.f32.mrb[5].mxu0 }
 0x2f4   : > { %1743 = vrcp.f32 %v903_v63  ;;  %v2180_v0 = vpop.f32.mrb[6].mxu1  ;;  %v1563_v1 = vpop.f32.mrb[6].mxu0 }
 0x2f5   : > { %v2182_v2 = vpop.f32.mrb[7].mxu1  ;;  %v906_v3 = vpop.f32.mrb[7].mxu0  ;;  %1745 = vrcp.f32 %v1563_v1 }
 0x2f6   : > { %1747 = vrcp.f32 %v906_v3 }
 0x2fa   : > { %v2184_v4 = vpop.f32.mrb[8].mxu1  ;;  %v1566_v5 = vpop.f32.mrb[8].mxu0 }
 0x2fb   : > { %v2186_v6 = vpop.f32.mrb[9].mxu1  ;;  %v919_v8 = vpop.f32.mrb[9].mxu0  ;;  %1749 = vrcp.f32 %v1566_v5 }
 0x2fc   : > { %v2188_v10 = vpop.f32.mrb[10].mxu1  ;;  %v1567_v11 = vpop.f32.mrb[10].mxu0  ;;  %1751 = vrcp.f32 %v919_v8 }
 0x2fd   : > { %v1742_v12 = vpop.eup %1741  ;;  %v2190_v13 = vpop.f32.mrb[11].mxu1 }
 0x2fe   : > { %v922_v14 = vpop.f32.mrb[11].mxu0  ;;  %v1744_v16 = vpop.eup %1743  ;;  %994 = vperm.xlu0 %1735, %v1742_v12  }
 0x2ff   : > { %984 = vperm.xlu1 %1736, %v1744_v16   ;;  %v1746_v18 = vpop.eup %1745 }
 0x300   : > { %v1748_v27 = vpop.eup %1747 }
 0x302   : > { %999 = vperm.xlu0 %1735, %v1746_v18   ;;  %v1570_v19 = vpop.f32.mrb[12].mxu0  ;;  %v2192_v20 = vpop.f32.mrb[12].mxu1 }
 0x303   : > { %v935_v21 = vpop.f32.mrb[13].mxu0  ;;  %v2194_v22 = vpop.f32.mrb[13].mxu1 }
 0x304   : > { %v1571_v24 = vpop.f32.mrb[14].mxu0  ;;  %v2196_v26 = vpop.f32.mrb[14].mxu1 }
 0x305   : > { %1753 = vrcp.f32 %v1571_v24  ;;  %v938_v28 = vpop.f32.mrb[15].mxu0  ;;  %v2198_v31 = vpop.f32.mrb[15].mxu1 }
 0x306   : > { %1755 = vrcp.f32 %v1567_v11  ;;  %989 = vperm.xlu0 %1735, %v1748_v27   ;;  %v1750_v32 = vpop.eup %1749 }
 0x307   : > { %1757 = vrcp.f32 %v938_v28  ;;  %v1752_v40 = vpop.eup %1751 }
 0x308   : > { %1759 = vrcp.f32 %v922_v14 }
 0x30a   : > { %1014 = vperm.xlu0 %1735, %v1750_v32   ;;  %v1574_v33 = vpop.f32.mrb[16].mxu0  ;;  %v2200_v34 = vpop.f32.mrb[16].mxu1 }
 0x30b   : > { %v951_v36 = vpop.f32.mrb[17].mxu0  ;;  %v2202_v37 = vpop.f32.mrb[17].mxu1 }
 0x30c   : > { %v1575_v38 = vpop.f32.mrb[18].mxu0  ;;  %v2204_v39 = vpop.f32.mrb[18].mxu1 }
 0x30d   : > { %1761 = vrcp.f32 %v1575_v38  ;;  %v954_v42 = vpop.f32.mrb[19].mxu0  ;;  %v2206_v43 = vpop.f32.mrb[19].mxu1 }
 0x30e   : > { %1763 = vrcp.f32 %v1570_v19  ;;  %1004 = vperm.xlu0 %1735, %v1752_v40  }
 0x30f   : > { %v1754_v44 = vpop.eup %1753  ;;  %1765 = vrcp.f32 %v954_v42 }
 0x310   : > { %v1756_v45 = vpop.eup %1755  ;;  %1039 = vperm.xlu1 %1736, %v1754_v44   ;;  %1767 = vrcp.f32 %v935_v21 }
 0x311   : > { %v1758_v46 = vpop.eup %1757  ;;  %1769 = vrcp.f32 %v1574_v33 }
 0x312   : > { %1019 = vperm.xlu0 %1735, %v1756_v45   ;;  %v1760_v48 = vpop.eup %1759  ;;  %1771 = vrcp.f32 %v951_v36 }
 0x314   : > { %1029 = vperm.xlu1 %1736, %v1758_v46  }
 0x316   : > { %1009 = vperm.xlu0 %1735, %v1760_v48  }
 0x317   : > { %v1762_v49 = vpop.eup %1761 }
 0x318   : > { %v1764_v50 = vpop.eup %1763  ;;  %1059 = vperm.xlu1 %1736, %v1762_v49  }
 0x319   : > { %v1766_v51 = vpop.eup %1765 }
 0x31a   : > { %1034 = vperm.xlu0 %1735, %v1764_v50   ;;  %v1768_v52 = vpop.eup %1767 }
 0x31b   : > { %v1770_v54 = vpop.eup %1769 }
 0x31c   : > { %1049 = vperm.xlu1 %1736, %v1766_v51   ;;  %v1772_v55 = vpop.eup %1771 }
 0x31e   : > { %1024 = vperm.xlu0 %1735, %v1768_v52  }
 0x322   : > { %1054 = vperm.xlu0 %1735, %v1770_v54  }
 0x326   : > { %1044 = vperm.xlu0 %1735, %v1772_v55  }
 0x340   : > { %697 = vmax.xlane.f32.xlu1 %v2151_v25 }
 0x345   : > { %699 = vmax.xlane.f32.xlu0 %v2153_v30 }
 0x37d   : > { %v995_v56 = vpop.permute.xlu0 %994 }
 0x37e   : > { %v1064_v58 = vmul.f32 %v2176_v60, %v995_v56  ;;  %v985_v63 = vpop.permute.xlu1 %984 }
 0x37f   : > { %v1062_v5 = vmul.f32 %v985_v63, %v2178_v62 }
 0x381   : > { %v1000_v57 = vpop.permute.xlu0 %999 }
 0x382   : > { %v1065_v61 = vmul.f32 %v2180_v0, %v1000_v57 }
 0x384   : > { %v1079_v1 = vpack.c.bf16 %v1065_v61, %v1064_v58 }
 0x385   : > { %v990_v3 = vpop.permute.xlu0 %989 }
 0x386   : > { %v1063_v8 = vmul.f32 %v990_v3, %v2182_v2 }
 0x388   : > { %v1078_v11 = vpack.c.bf16 %v1063_v8, %v1062_v5 }
 0x389   : > { %v1015_v12 = vpop.permute.xlu0 %1014 }
 0x38a   : > { %1094 = vrot.lane.b32.xlu0 %v1078_v11, %s1878_s12  ;;  %v1068_v60 = vmul.f32 %v2184_v4, %v1015_v12 }
 0x38d   : > { %v1005_v14 = vpop.permute.xlu0 %1004 }
 0x38e   : > { %1096 = vrot.lane.b32.xlu0 %v1079_v1, %s1878_s12  ;;  %v1066_v62 = vmul.f32 %v1005_v14, %v2186_v6 }
 0x38f   : > { %v1040_v16 = vpop.permute.xlu1 %1039 }
 0x390   : > { %v1073_v32 = vmul.f32 %v2196_v26, %v1040_v16 }
 0x391   : > { %v1020_v18 = vpop.permute.xlu0 %1019 }
 0x392   : > { %v1069_v0 = vmul.f32 %v2188_v10, %v1020_v18 }
 0x393   : > { %v1030_v24 = vpop.permute.xlu1 %1029 }
 0x394   : > { %v1081_v19 = vpack.c.bf16 %v1069_v0, %v1068_v60  ;;  %v1071_v10 = vmul.f32 %v1030_v24, %v2198_v31 }
 0x395   : > { %v1010_v21 = vpop.permute.xlu0 %1009 }
 0x396   : > { %v1067_v2 = vmul.f32 %v1010_v21, %v2190_v13 }
 0x397   : > { %v1060_v38 = vpop.permute.xlu1 %1059 }
 0x398   : > { %v1080_v27 = vpack.c.bf16 %v1067_v2, %v1066_v62  ;;  %v1077_v42 = vmul.f32 %v2204_v39, %v1060_v38 }
 0x399   : > { %v1035_v28 = vpop.permute.xlu0 %1034 }
 0x39a   : > { %v1072_v33 = vmul.f32 %v2192_v20, %v1035_v28  ;;  %1098 = vrot.lane.b32.xlu1 %v1080_v27, %s1878_s12 }
 0x39b   : > { %v1050_v20 = vpop.permute.xlu1 %1049 }
 0x39c   : > { %v1083_v36 = vpack.c.bf16 %v1073_v32, %v1072_v33  ;;  %v1075_v46 = vmul.f32 %v1050_v20, %v2206_v43 }
 0x39d   : > { %v1025_v4 = vpop.permute.xlu0 %1024 }
 0x39e   : > { %v1070_v40 = vmul.f32 %v1025_v4, %v2194_v22  ;;  %1100 = vrot.lane.b32.xlu1 %v1081_v19, %s1878_s12 }
 0x3a0   : > { %v1082_v6 = vpack.c.bf16 %v1071_v10, %v1070_v40 }
 0x3a1   : > { %v1055_v13 = vpop.permute.xlu0 %1054 }
 0x3a2   : > { %v1076_v44 = vmul.f32 %v2200_v34, %v1055_v13  ;;  %1104 = vrot.lane.b32.xlu1 %v1083_v36, %s1878_s12  ;;  %1102 = vrot.lane.b32.xlu0 %v1082_v6, %s1878_s12 }
 0x3a4   : > { %v1085_v26 = vpack.c.bf16 %v1077_v42, %v1076_v44 }
 0x3a5   : > { %v1045_v45 = vpop.permute.xlu0 %1044 }
 0x3a6   : > { %v1074_v31 = vmul.f32 %v1045_v45, %v2202_v37  ;;  %1108 = vrot.lane.b32.xlu1 %v1085_v26, %s1878_s12 }
 0x3a8   : > { %v1084_v22 = vpack.c.bf16 %v1075_v46, %v1074_v31 }
 0x3aa   : > { %1106 = vrot.lane.b32.xlu0 %v1084_v22, %s1878_s12 }
 0x3cd   : > { %v698_v48 = vpop.xlane.xlu1 %697 }
 0x3ce   : > { %v701_v39 = vsub.f32 %v2151_v25, %v698_v48 }
 0x3d0   : > { %v703_v34 = vmul.f32 1.442695, %v701_v39 }
 0x3d2   : > { %1773 = vpow2.f32 %v703_v34  ;;  %v700_v49 = vpop.xlane.xlu0 %699 }
 0x3d3   : > { %v702_v50 = vsub.f32 %v2153_v30, %v700_v49 }
 0x3d5   : > { %v705_v51 = vmul.f32 1.442695, %v702_v50 }
 0x3d7   : > { %1775 = vpow2.f32 %v705_v51 }
 0x3dc   : > { %v1774_v52 = vpop.eup %1773 }
 0x3dd   : > { %707 = vadd.xlane.f32.xlu0 %v1774_v52 }
 0x3e1   : > { %v1776_v43 = vpop.eup %1775 }
 0x3e2   : > { %709 = vadd.xlane.f32.xlu1 %v1776_v43  ;;  %v711_v37 = vpack.c.bf16 %v1776_v43, %v1774_v52 }
 0x3fc   : > { %v1095_v54 = vpop.permute.xlu0 %1094 }
 0x3fd   : > { %v1112_v55 = vsel %vm326_vm1, %v2028_v17, %v1095_v54 }
 0x3fe   : > { %1577 = vmatpush3.bf16.msra.mxu1 %v1112_v55 }
 0x3ff   : > { %1578 = vmatprep.subr.bf16.mxu1 %v1875_v7 }
 0x400   : > { %v1097_v25 = vpop.permute.xlu0 %1096 }
 0x401   : > { %v1116_v56 = vsel %vm326_vm1, %v2048_v23, %v1097_v25 }
 0x402   : > { %1579 = vmatpush3.bf16.msra.mxu1 %v1116_v56 }
 0x403   : > { %1580 = vmatprep.subr.bf16.mxu1 %v1875_v7 }
 0x40c   : > { %v1099_v30 = vpop.permute.xlu1 %1098 }
 0x40d   : > { %v1120_v57 = vsel %vm326_vm1, %v2062_v29, %v1099_v30 }
 0x40e   : > { %1581 = vmatpush3.bf16.msra.mxu1 %v1120_v57 }
 0x40f   : > { %1582 = vmatprep.subr.bf16.mxu1 %v1875_v7 }
 0x410   : > { %v1101_v58 = vpop.permute.xlu1 %1100 }
 0x411   : > { %v1124_v17 = vsel %vm326_vm1, %v2076_v35, %v1101_v58 }
 0x412   : > { %1583 = vmatpush3.bf16.msra.mxu1 %v1124_v17 }
 0x413   : > { %1584 = vmatprep.subr.bf16.mxu1 %v1875_v7 }
 0x414   : > { %v1103_v61 = vpop.permute.xlu0 %1102  ;;  %v1105_v63 = vpop.permute.xlu1 %1104 }
 0x415   : > { %v1128_v23 = vsel %vm326_vm1, %v2090_v41, %v1103_v61  ;;  %v1132_v29 = vsel %vm326_vm1, %v2104_v47, %v1105_v63 }
 0x416   : > { %1585 = vmatpush3.bf16.msra.mxu1 %v1128_v23 }
 0x417   : > { %1586 = vmatprep.subr.bf16.mxu1 %v1875_v7 }
 0x418   : > { %v1109_v3 = vpop.permute.xlu1 %1108 }
 0x419   : > { %v1140_v41 = vsel %vm326_vm1, %v2132_v59, %v1109_v3 }
 0x41a   : > { %1587 = vmatpush3.bf16.msra.mxu1 %v1132_v29 }
 0x41b   : > { %1588 = vmatprep.subr.bf16.mxu1 %v1875_v7 }
 0x41c   : > { %v1107_v35 = vpop.permute.xlu0 %1106 }
 0x41d   : > { %v1136_v1 = vsel %vm326_vm1, %v2118_v53, %v1107_v35 }
 0x41e   : > { %1589 = vmatpush3.bf16.msra.mxu1 %v1136_v1 }
 0x41f   : > { %1590 = vmatprep.subr.bf16.mxu1 %v1875_v7 }
 0x422   : > { %1591 = vmatpush3.bf16.msra.mxu1 %v1140_v41 }
 0x425   : > { %1593 = vmatmul.mubr.bf16.vlgmr.msra.gmra.mrb[20].mxu1 %v711_v37 }
 0x46a   : > { %v708_v5 = vpop.xlane.xlu0 %707 }
 0x46b   : > { %1777 = vrcp.f32 %v708_v5 }
 0x46f   : > { %v710_v8 = vpop.xlane.xlu1 %709 }
 0x470   : > { %1779 = vrcp.f32 %v710_v8 }
 0x475   : > { %v1778_v7 = vpop.eup %1777 }
 0x47a   : > { %v1780_v11 = vpop.eup %1779 }
 0x4f8   : > { %v1176_v47 = vpop.f32.mrb[20].mxu1 }
 0x4f9   : > { %v1185_v53 = vmul.f32 %v1778_v7, %v1176_v47  ;;  %v1594_v59 = vpop.f32.mrb[21].mxu1 }
 0x4fa   : > { %v1179_v12 = vpop.f32.mrb[22].mxu1 }
 0x4fb   : > { %v1186_v14 = vmul.f32 %v1780_v11, %v1179_v12  ;;  %v1595_v16 = vpop.f32.mrb[23].mxu1  ;;  %1213 = vrot.lane.b32.xlu0 %v1185_v53, %s1879_s14  ;;  %v1200_v18 = vmul.f32 %v1185_v53, %v2016_v9 }
 0x4fd   : > { %1215 = vrot.lane.b32.xlu1 %v1186_v14, %s1879_s14  ;;  %v1201_v60 = vmul.f32 %v1186_v14, %v2025_v15 }
 0x4ff   : > { %1191 = vrot.lane.b32.xlu0 %v1185_v53, %s1878_s12 }
 0x501   : > { %1193 = vrot.lane.b32.xlu1 %v1186_v14, %s1878_s12 }
 0x503   : > { %1204 = vrot.lane.b32.xlu0 %v1200_v18, %s1880_s19 }
 0x505   : > { %1206 = vrot.lane.b32.xlu1 %v1201_v60, %s1880_s19 }
 0x56d   : > { %v1214_v0 = vpop.permute.xlu0 %1213 }
 0x56e   : > { %v1219_v19 = vmul.f32 %v1214_v0, %v2016_v9 }
 0x56f   : > { %v1216_v21 = vpop.permute.xlu1 %1215 }
 0x570   : > { %v1220_v62 = vmul.f32 %v1216_v21, %v2025_v15  ;;  %1223 = vrot.lane.b32.xlu0 %v1219_v19, %s1879_s14 }
 0x571   : > { %v1192_v2 = vpop.permute.xlu0 %1191 }
 0x572   : > { %1198 = vst.msk [vmem:[%s2262_s1] sm:$0xff] %vm1197_vm7, %v1192_v2  ;;  %1225 = vrot.lane.b32.xlu1 %v1220_v62, %s1879_s14 }
 0x573   : > { %v1194_v24 = vpop.permute.xlu1 %1193 }
 0x574   : > { %1199 = vst.msk [vmem:[%s2262_s1 + $0x8] sm:$0xff] %vm1197_vm7, %v1194_v24 }
 0x575   : > { %v1205_v27 = vpop.permute.xlu0 %1204 }
 0x576   : > { %1211 = vst.msk [vmem:[%s2262_s1] sm:$0xff] %vm1210_vm8, %v1205_v27 }
 0x577   : > { %v1207_v28 = vpop.permute.xlu1 %1206 }
 0x578   : > { %1212 = vst.msk [vmem:[%s2262_s1 + $0x8] sm:$0xff] %vm1210_vm8, %v1207_v28 }
 0x5e2   : > { %v1224_v9 = vpop.permute.xlu0 %1223 }
 0x5e3   : > { %1230 = vst.msk [vmem:[%s2262_s1] sm:$0xff] %vm1229_vm9, %v1224_v9 }
 0x5e4   : > { %v1226_v15 = vpop.permute.xlu1 %1225 }
 0x5e5   : > { %1231 = vst.msk [vmem:[%s2262_s1 + $0x8] sm:$0xff] %vm1229_vm9, %v1226_v15 }
 0x5e6   : > { %1818 = shalt.err (!%p1815_p13)
}
 0x5e7   : > { %s1819_s11 = scalar_lea.hbm %s2285_s28, 256  ;;  %s1823_s0 = scalar_lea.hbm %s2340_s8, 512 }
 0x5e8   : > { %p1820_p0 = scmp.ne.s32.totalorder %s2285_s28, %s1819_s11  ;;  %p1824_p5 = scmp.lt.u32.totalorder %s2285_s28, %s2340_s8 }
 0x5e9   : > { %p1825_p6 = scmp.lt.u32.totalorder %s1823_s0, %s1819_s11  ;;  %p1827_p8 = scmp.lt.u32.totalorder %s1819_s11, %s2285_s28 }
 0x5ea   : > { %p1821_p3 = pnand %p1820_p0, %p1976_p1 }
 0x5eb   : > { %p1826_p7 = por %p1825_p6, %p1824_p5 }
 0x5ec   : > { %p1822_p4 = pneg %p1821_p3 }
 0x5ed   : > { %p1828_p9 = por %p1827_p8, %p1826_p7 }
 0x5ef   : > { %p1829_p10 = pnand %p1828_p9, %p1822_p4 }
 0x5f1   : > { %1832 = shalt.err (!%p1829_p10)
}
 0x5f2   : > { %s1882_s19 = smov 128   ;;  %s1883_s21 = smov 8  }
 0x5f3   : > { %1684 = dma.vmem_to_hbm [thread:$0]  (%p1976_p1), %s2287_s22, 256, %s2285_s28, %s2293_s29, %s1882_s19, %s1882_s19, %s1883_s21  }
 0x5f4 PF: > { %p1690_p11 = scmp.ge.s32.totalorder %s1869_s18, 2  ;;  %s1261_s26 = sand.u32 1, %s1857_s15  }
 0x5f5   : > { %s1262_s27 = scalar_lea.sflag [#allocation7], %s1261_s26 }
 0x5f6   : > { %p1687_p12 = pnand %p1690_p11, %p1980_p2 }
 0x5f8   : > { %1852 = dma.done.wait (!%p1687_p12), %s1262_s27, 256  }
 0x5f9   : > { %1854 = vsyncadd (!%p1687_p12), %s1262_s27, 4294967040  ;;  %p29_p13 = scmp.ge.s32.totalorder %s1963_s20, 4   ;;  %s2347_s15 = smov %s1861_s16 }
 0x5fa   : > { %s2348_s16 = smov %s1865_s17  ;;  %s2349_s17 = smov %s1974_s23 }
 0x5fb   : > { %s2350_s18 = smov %s1963_s20  ;;  %31 = sbr.rel (!%p29_p13) target bundleno = 28 (0x1c), region = 82 }
 0x602   :  { %1267 = vsyncpa [#allocation7], 1 }
 0x603   :  { %1269 = vsyncpa [#allocation7 + $0x1], 1 }

</bundles_post_ra>
